<compile_context>
chip_gen: v6e
topology: v6e:2x2x1
jax: 0.10.0
libtpu: 0.0.40
codegen_flags: <defaults>
</compile_context>

<pallas_src>
import jax
import jax.numpy as jnp
from jax.experimental import pallas as pl
from jax.experimental.pallas import tpu as pltpu


def _fused_conv_relu_kernel(x_ref, w_ref, o_ref):
    # x_ref: (K, N*HW)   im2col of the input (+ trailing ones-row for bias)
    # w_ref: (C2, K)     fused (1x1 ∘ 3x3) weights, bias as last column
    # o_ref: (C2, N*HW)  full HxW output grid; wrapper keeps the valid region
    o_ref[...] = jnp.maximum(
        jnp.dot(w_ref[...], x_ref[...], preferred_element_type=jnp.float32),
        0.0)


def conv_conv_relu(x, w1, b1, w2, b2):
    """Fused Conv2d(Cin->C1,1) -> Conv2d(C1->C2,3,valid) -> ReLU.

    x:  (N, Cin, H, W) f32 (NCHW, like the PyTorch module)
    w1: (Cin, C1),  b1: (C1,)
    w2: (3, 3, C1, C2),  b2: (C2,)
    returns (N, C2, H-2, W-2) f32
    """
    N, Cin, H, W = x.shape
    C1 = w1.shape[1]
    C2 = w2.shape[-1]
    Ho, Wo = H - 2, W - 2
    HW = H * W
    NHW = N * HW

    # ---- algebraic fusion of the two convolutions (wrapper side, cheap) ----
    w2_flat = w2.reshape(9, C1, C2)                              # (9, C1, C2)
    # w_comb[c2, k*Cin + cin] = sum_c1 w1[cin, c1] * w2[k, c1, c2]
    w_comb = jnp.einsum("ci,kio->okc", w1, w2_flat).reshape(C2, 9 * Cin)
    b_comb = b2 + jnp.einsum("i,kio->o", b1, w2_flat)            # (C2,)
    # Fold the bias into the matmul via a trailing ones-row in the im2col.
    w_pack = jnp.concatenate([w_comb, b_comb[:, None]], axis=1)  # (C2, 9*Cin+1)

    # ---- wrapper-side im2col: (9*Cin + 1, N*HW), batch folded onto lanes ----
    max_shift = 2 * W + 2                                        # largest tap offset
    x_flat = x.reshape(N, Cin, HW)
    x_pad = jnp.pad(x_flat, ((0, 0), (0, 0), (0, max_shift)))
    offsets = [(k // 3) * W + (k % 3) for k in range(9)]
    taps = [x_pad[:, :, s:s + HW] for s in offsets]              # 9 x (N, Cin, HW)
    im2col = jnp.stack(taps, axis=1).reshape(N, 9 * Cin, HW)     # tap-major, cin-minor
    im2col = jnp.transpose(im2col, (1, 0, 2)).reshape(9 * Cin, NHW)
    ones = jnp.ones((1, NHW), dtype=x.dtype)
    im2col = jnp.concatenate([im2col, ones], axis=0)             # (9*Cin + 1, N*HW)

    K = 9 * Cin + 1

    out = pl.pallas_call(
        _fused_conv_relu_kernel,
        out_shape=jax.ShapeDtypeStruct((C2, NHW), jnp.float32),
        grid_spec=pltpu.PrefetchScalarGridSpec(
            num_scalar_prefetch=0,
            grid=(1,),
            in_specs=[
                pl.BlockSpec((K, NHW), lambda i: (0, 0)),
                pl.BlockSpec((C2, K), lambda i: (0, 0)),
            ],
            out_specs=pl.BlockSpec((C2, NHW), lambda i: (0, 0)),
        ),
        compiler_params=pltpu.CompilerParams(
            dimension_semantics=("arbitrary",)),
    )(im2col, w_pack)

    # (C2, N*HW) -> (N, C2, H, W), keep only the valid 3x3 "valid" region.
    out = out.reshape(C2, N, H, W).transpose(1, 0, 2, 3)
    return out[:, :, :Ho, :Wo]


def _reference(x, w1, b1, w2, b2):
    """Plain-JAX, unfused reference (conv1x1 -> conv3x3 -> ReLU), NCHW."""
    y1 = jnp.einsum("nchw,co->nohw", x, w1) + b1[None, :, None, None]
    N, C1, H, W = y1.shape
    Ho, Wo = H - 2, W - 2
    C2 = w2.shape[-1]
    acc = jnp.zeros((N, C2, Ho, Wo), jnp.float32)
    for ki in range(3):
        for kj in range(3):
            acc = acc + jnp.einsum("nchw,co->nohw",
                                   y1[:, :, ki:ki + Ho, kj:kj + Wo],
                                   w2[ki, kj])
    return jnp.maximum(acc + b2[None, :, None, None], 0.0)


if __name__ == "__main__":
    key = jax.random.PRNGKey(0)
    k_x, k_w1, k_b1, k_w2, k_b2 = jax.random.split(key, 5)

    # Small shapes consistent with the module: N=2, Cin=3, H=W=16.
    N, Cin, H, W = 2, 3, 16, 16
    C1, C2 = 16, 8

    # NCHW input, like the PyTorch module.
    x = jax.random.normal(k_x, (N, Cin, H, W), dtype=jnp.float32)

    # Deterministic parameters (shapes from Conv2d(3,16,1) and Conv2d(16,8,3)).
    w1 = jax.random.normal(k_w1, (Cin, C1), dtype=jnp.float32) * 0.1   # 1x1 conv
    b1 = jax.random.normal(k_b1, (C1,), dtype=jnp.float32) * 0.1
    w2 = jax.random.normal(k_w2, (3, 3, C1, C2), dtype=jnp.float32) * 0.1
    b2 = jax.random.normal(k_b2, (C2,), dtype=jnp.float32) * 0.1

    out = conv_conv_relu(x, w1, b1, w2, b2)
    out = jax.block_until_ready(out)

    ref = _reference(x, w1, b1, w2, b2)
    assert out.shape == (N, C2, H - 2, W - 2), out.shape
    assert jnp.allclose(out, ref, atol=1e-4, rtol=1e-4), \
        float(jnp.max(jnp.abs(out - ref)))

    print("KERNEL_OK")
</pallas_src>

<mosaic_0001>
module attributes {stable_mosaic.version = 11 : i64} {
  func.func @_fused_conv_relu_kernel(%arg0: i32, %arg1: memref<28x512xf32, #tpu.memory_space<vmem>>, %arg2: memref<8x28xf32, #tpu.memory_space<vmem>>, %arg3: memref<8x512xf32, #tpu.memory_space<vmem>>) attributes {dimension_semantics = [#tpu.dimension_semantics<arbitrary>], iteration_bounds = array<i64: 1>, scalar_prefetch = 0 : i64, scratch_operands = 0 : i64, tpu.core_type = #tpu.core_type<tc>, window_params = [{pipeline_mode = #tpu.pipeline_mode<synchronous>, transform_indices = @transform_0, window_bounds = array<i64: 28, 512>}, {pipeline_mode = #tpu.pipeline_mode<synchronous>, transform_indices = @transform_1, window_bounds = array<i64: 8, 28>}, {pipeline_mode = #tpu.pipeline_mode<synchronous>, transform_indices = @transform_2, window_bounds = array<i64: 8, 512>}]} {
    %c0 = arith.constant 0 : index
    %c0_0 = arith.constant 0 : index
    %0 = vector.load %arg2[%c0, %c0_0] : memref<8x28xf32, #tpu.memory_space<vmem>>, vector<8x28xf32>
    %c0_1 = arith.constant 0 : index
    %c0_2 = arith.constant 0 : index
    %1 = vector.load %arg1[%c0_1, %c0_2] : memref<28x512xf32, #tpu.memory_space<vmem>>, vector<28x512xf32>
    %cst = arith.constant dense<0.000000e+00> : vector<8x512xf32>
    %2 = tpu.matmul %0, %1, %cst {dimension_numbers = #tpu.dot_dimension_numbers<[1], [0], [0], [1], [0, 0, 1, 1], [], []>} : vector<8x28xf32>, vector<28x512xf32>, vector<8x512xf32> -> vector<8x512xf32>
    %cst_3 = arith.constant 0.000000e+00 : f32
    %3 = vector.broadcast %cst_3 : f32 to vector<8x512xf32>
    %4 = arith.maximumf %2, %3 : vector<8x512xf32>
    %c0_4 = arith.constant 0 : index
    %c0_5 = arith.constant 0 : index
    %5 = vector.load %arg3[%c0_4, %c0_5] : memref<8x512xf32, #tpu.memory_space<vmem>>, vector<8x512xf32>
    tpu.vector_store %arg3[%c0_4, %c0_5], %4 {strides = array<i32>} : memref<8x512xf32, #tpu.memory_space<vmem>>, vector<8x512xf32>,
    return
  }
  func.func @transform_0(%arg0: i32) -> (i32, i32) {
    %c0_i32 = arith.constant 0 : i32
    %c0_i32_0 = arith.constant 0 : i32
    %c0_i32_1 = arith.constant 0 : i32
    return %c0_i32, %c0_i32_0 : i32, i32
  }
  func.func @transform_1(%arg0: i32) -> (i32, i32) {
    %c0_i32 = arith.constant 0 : i32
    %c0_i32_0 = arith.constant 0 : i32
    %c0_i32_1 = arith.constant 0 : i32
    return %c0_i32, %c0_i32_0 : i32, i32
  }
  func.func @transform_2(%arg0: i32) -> (i32, i32) {
    %c0_i32 = arith.constant 0 : i32
    %c0_i32_0 = arith.constant 0 : i32
    %c0_i32_1 = arith.constant 0 : i32
    return %c0_i32, %c0_i32_0 : i32, i32
  }
}

</mosaic_0001>

<bundles_post_ra>
// kernel: tpu_custom_call.1
= control target key start
LH: loop header
LB: loop body
LE: loop exit
PB: predicated region body
PF: predicated region fallthrough
CT: control target
= control target key end

     0   :  { %7 = vsyncpa [#allocation3], 0  ;;  %s346_s0 = inlined_call_operand.hbm [shape: f32[28,512], index: 0, kind: input, shape index: {}]   ;;  %s347_s1 = inlined_call_operand.hbm [shape: f32[8,28], index: 1, kind: input, shape index: {}]   ;;  %s348_s2 = inlined_call_operand.hbm [shape: f32[8,512], index: 2, kind: output, shape index: {}]  }
   0x1   :  { %8 = vsyncpa [#allocation6], 0 }
   0x2   :  { %9 = vsyncpa [#allocation4], 0  ;;  %s316_s9 = smov [#allocation2]  }
   0x3   :  { %s15_s10 = sshll.u32 %s316_s9, 4  ;;  %s16_s10 = int_to_ptr.vmem [resolvable:$true] %s15_s10 }
   0x4   :  { %s258_s11 = scalar_lea.vmem %s16_s10, 2048  ;;  %p263_p1 = scmp.lt.s32.totalorder %s16_s10, %s16_s10 }
   0x5   :  { %p259_p0 = scmp.ne.s32.totalorder %s16_s10, %s258_s11  ;;  %p264_p2 = scmp.lt.s32.totalorder %s258_s11, %s258_s11 }
   0x7   :  { %p265_p3 = por %p264_p2, %p263_p1 }
   0x9   :  { %p266_p4 = pnand %p265_p3, %p259_p0 }
   0xb   :  { %269 = shalt.err (!%p266_p4)
}
   0xc   :  { %s317_s12 = smov 512   ;;  %s318_s13 = smov 32  }
   0xd   :  { %21 = dma.hbm_to_vmem [thread:$0]  %s346_s0, 2048, %s16_s10, [#allocation3], %s317_s12, %s317_s12, %s318_s13  }
   0xe   :  { %s319_s16 = smov [#allocation5]  }
   0xf   :  { %s28_s17 = sshll.u32 %s319_s16, 4  ;;  %s29_s17 = int_to_ptr.vmem [resolvable:$true] %s28_s17 }
  0x10   :  { %s278_s18 = scalar_lea.vmem %s29_s17, 128  ;;  %p283_p6 = scmp.lt.s32.totalorder %s29_s17, %s29_s17 }
  0x11   :  { %p279_p5 = scmp.ne.s32.totalorder %s29_s17, %s278_s18  ;;  %p284_p7 = scmp.lt.s32.totalorder %s278_s18, %s278_s18 }
  0x13   :  { %p285_p8 = por %p284_p7, %p283_p6 }
  0x15   :  { %p286_p9 = pnand %p285_p8, %p279_p5 }
  0x17   :  { %289 = shalt.err (!%p286_p9)
}
  0x18   :  { %31 = dma.hbm_to_vmem [thread:$0]  %s347_s1, 128, %s29_s17, [#allocation6]  }
  0x19   :  { %310 = dma.done.wait [#allocation3], 2048  }
  0x1a   :  { %311 = vsyncadd [#allocation3], 4294965248 }
  0x1b   :  { %312 = dma.done.wait [#allocation6], 128  }
  0x1c   :  { %313 = vsyncadd [#allocation6], 4294967168  ;;  %v320_v0 = vmov 0.0   ;;  %vm59_vm0 = vcmask 1043456   ;;  %v52_v1 = vld [vmem:[#allocation2 + $0x68] sm:$0xf] }
  0x1d   :  { %136 = vmatprep.mubr.f32.mxu0 %v320_v0  ;;  %207 = vmatprep.mubr.f32.mxu1 %v320_v0  ;;  %v54_v2 = vld [vmem:[#allocation2 + $0x78] sm:$0xf]  ;;  %v51_v3 = vld [vmem:[#allocation2 + $0x60] sm:$0xf]  ;;  %v53_v4 = vld [vmem:[#allocation2 + $0x70] sm:$0xf] }
  0x1e   :  { %238 = vmatprep.subr.msk.mxu0 %vm59_vm0, %v52_v1  ;;  %241 = vmatprep.subr.msk.mxu1 %vm59_vm0, %v54_v2  ;;  %v48_v5 = vld [vmem:[#allocation2 + $0x48] sm:$0xff]  ;;  %v50_v6 = vld [vmem:[#allocation2 + $0x58] sm:$0xff]  ;;  %v47_v7 = vld [vmem:[#allocation2 + $0x40] sm:$0xff]  ;;  %vm55_vm1 = vcmask 228352   ;;  %s321_s0 = smov [#allocation7]  }
  0x1f   :  { %239 = vmatpush1.msk.msra.mxu0 %vm59_vm0, %v51_v3  ;;  %242 = vmatpush1.msk.msra.mxu1 %vm59_vm0, %v53_v4  ;;  %v49_v8 = vld [vmem:[#allocation2 + $0x50] sm:$0xff]  ;;  %v44_v9 = vld [vmem:[#allocation2 + $0x28] sm:$0xff]  ;;  %v46_v10 = vld [vmem:[#allocation2 + $0x38] sm:$0xff]  ;;  %s228_s1 = sshll.u32 %s321_s0, 4  ;;  %s229_s1 = int_to_ptr.vmem [resolvable:$true] %s228_s1 }
  0x20   :  { %98 = vmatprep.subr.mxu0 %v48_v5  ;;  %169 = vmatprep.subr.mxu1 %v50_v6  ;;  %v43_v11 = vld [vmem:[#allocation2 + $0x20] sm:$0xff]  ;;  %v45_v12 = vld [vmem:[#allocation2 + $0x30] sm:$0xff]  ;;  %v40_v13 = vld [vmem:[#allocation2 + $0x8] sm:$0xff]  ;;  %s290_s21 = scalar_lea.vmem %s229_s1, 512  ;;  %p295_p11 = scmp.lt.s32.totalorder %s229_s1, %s229_s1 }
  0x21   :  { %99 = vmatpush1.msra.mxu0 %v47_v7  ;;  %170 = vmatpush1.msra.mxu1 %v49_v8  ;;  %v42_v14 = vld [vmem:[#allocation2 + $0x18] sm:$0xff]  ;;  %v39_v15 = vld [vmem:[#allocation2] sm:$0xff]  ;;  %v41_v16 = vld [vmem:[#allocation2 + $0x10] sm:$0xff]  ;;  %p291_p10 = scmp.ne.s32.totalorder %s229_s1, %s290_s21  ;;  %p296_p12 = scmp.lt.s32.totalorder %s290_s21, %s290_s21 }
  0x22   :  { %100 = vmatprep.subr.mxu0 %v44_v9  ;;  %171 = vmatprep.subr.mxu1 %v46_v10  ;;  %v38_v17 = vld [vmem:[#allocation5] sm:$0xff] }
  0x23   :  { %101 = vmatpush1.msra.mxu0 %v43_v11  ;;  %172 = vmatpush1.msra.mxu1 %v45_v12  ;;  %p297_p13 = por %p296_p12, %p295_p11 }
  0x24   :  { %102 = vmatprep.subr.mxu0 %v40_v13  ;;  %173 = vmatprep.subr.mxu1 %v42_v14 }
  0x25   :  { %103 = vmatpush1.msra.mxu0 %v39_v15  ;;  %174 = vmatpush1.msra.mxu1 %v41_v16  ;;  %p298_p0 = pnand %p297_p13, %p291_p10 }
  0x26   :  { %240 = vmatmul.mubr.msk.f32.vlgmr.msra.gmra.mxu0 %vm55_vm1, %v38_v17  ;;  %243 = vmatmul.mubr.msk.f32.vlgmr.msra.gmra.mxu1 %vm55_vm1, %v38_v17 }
  0xe6   :  { %v138_v18 = vpop.f32.mrf.mxu0  ;;  %v209_v19 = vpop.f32.mrf.mxu1 }
  0xe7   :  { %v214_v20 = vmax.f32 %v138_v18, 0.0  ;;  %v216_v21 = vmax.f32 %v209_v19, 0.0 }
  0xe8   :  { %v140_v22 = vpop.f32.mrf.mxu0  ;;  %v211_v23 = vpop.f32.mrf.mxu1 }
  0xe9   :  { %218 = vst [vmem:[#allocation7] sm:$0xff] %v214_v20  ;;  %220 = vst [vmem:[#allocation7 + $0x10] sm:$0xff] %v216_v21  ;;  %v215_v24 = vmax.f32 %v140_v22, 0.0  ;;  %v217_v25 = vmax.f32 %v211_v23, 0.0 }
  0xeb   :  { %219 = vst [vmem:[#allocation7 + $0x8] sm:$0xff] %v215_v24  ;;  %221 = vst [vmem:[#allocation7 + $0x18] sm:$0xff] %v217_v25 }
  0xec   :  { %301 = shalt.err (!%p298_p0)
}
  0xed   :  { %231 = dma.vmem_to_hbm [thread:$0]  %s229_s1, 512, %s348_s2, [#allocation4]  }
  0xee   :  { %314 = dma.done.wait [#allocation4], 512  }
  0xef   :  { %315 = vsyncadd [#allocation4], 4294966784 }
  0xf0   :  { %235 = vsyncpa [#allocation3], 1 }
  0xf1   :  { %236 = vsyncpa [#allocation6], 1 }
  0xf2   :  { %237 = vsyncpa [#allocation4], 1 }

</bundles_post_ra>
